<compile_context>
chip_gen: v7x
topology: tpu7x:2x2x1
jax: 0.10.0
libtpu: 0.0.40
codegen_flags: <defaults>
</compile_context>

<pallas_src>
import jax
import jax.numpy as jnp
from jax.experimental import pallas as pl
from jax.experimental.pallas import tpu as pltpu

EPS = 1e-5           # PyTorch BatchNorm1d default eps
PADDED_OUT = 128     # lane-dense padded output width
MAX_TK = 512         # fc1 K-tile (only used when input_size > MAX_TK)
H1, H2, H3 = 512, 256, 64


def _round_up(a, m):
    return ((a + m - 1) // m) * m


def mlp_kernel(x_ref,
               w1_ref, b1_ref,
               w2_ref, b2_ref,
               w3_ref, b3_ref,
               wo_ref, bo_ref,
               o_ref,
               acc_ref):
    """Grid = (batch_tile i, fc1-K tile k).  fc1 is accumulated over k into an
    f32 VMEM scratch; the rest of the MLP runs on the last k step."""
    k = pl.program_id(1)

    @pl.when(k == 0)
    def _():
        acc_ref[...] = jnp.zeros_like(acc_ref)

    # fc1 partial product for this K slice (bf16 inputs, f32 accumulation).
    acc_ref[...] += jnp.dot(x_ref[...].astype(jnp.bfloat16), w1_ref[...],
                            preferred_element_type=jnp.float32)

    @pl.when(k == pl.num_programs(1) - 1)
    def _():
        h = jnp.maximum(acc_ref[...] + b1_ref[...], 0.0).astype(jnp.bfloat16)
        h = jnp.maximum(
            jnp.dot(h, w2_ref[...], preferred_element_type=jnp.float32)
            + b2_ref[...], 0.0).astype(jnp.bfloat16)
        h = jnp.maximum(
            jnp.dot(h, w3_ref[...], preferred_element_type=jnp.float32)
            + b3_ref[...], 0.0).astype(jnp.bfloat16)
        out = jnp.dot(h, wo_ref[...],
                      preferred_element_type=jnp.float32) + bo_ref[...]
        o_ref[...] = out.astype(o_ref.dtype)


def fold_params(params, num_classes, kf):
    """Fold BN (running stats + affine) + Linear bias into the weights, pad the
    fc1 K dimension to `kf` and the output layer to a lane-dense 128 columns,
    and cast weights to bf16.  One-time transform, outside the kernel."""
    def fold(w, b, g, beta, m, v):
        scale = g * jax.lax.rsqrt(v + EPS)          # (1, out)
        return w * scale, (b - m) * scale + beta    # W', b'

    w1, b1 = fold(params["w1"], params["b1"], params["g1"], params["be1"],
                  params["m1"], params["v1"])
    w2, b2 = fold(params["w2"], params["b2"], params["g2"], params["be2"],
                  params["m2"], params["v2"])
    w3, b3 = fold(params["w3"], params["b3"], params["g3"], params["be3"],
                  params["m3"], params["v3"])

    F = w1.shape[0]
    if kf != F:                                   # zero-pad fc1 K dim
        w1 = jnp.pad(w1, ((0, kf - F), (0, 0)))

    pad = PADDED_OUT - num_classes                # lane-dense output layer
    wo = jnp.pad(params["wo"], ((0, 0), (0, pad)))
    bo = jnp.pad(params["bo"], ((0, 0), (0, pad)))

    bf = lambda a: a.astype(jnp.bfloat16)
    return (bf(w1), b1, bf(w2), b2, bf(w3), b3, bf(wo), bo)


def audio_classification_forward(x, params, num_classes=7):
    """x: [B, input_size] float32 -> logits [B, num_classes] float32."""
    B, F = x.shape

    # --- fc1 K tiling (only when input_size is large) -----------------------
    if F <= MAX_TK:
        TK, kf = F, F                 # full-dim block, no K padding needed
    else:
        TK = MAX_TK
        kf = _round_up(F, TK)

    # --- adaptive batch tile -------------------------------------------------
    TB = min(256, _round_up(B, 8))
    if pl.cdiv(B, TB) == 1 and B > 64:
        # Guarantee >=2 grid steps along the parallel batch axis so v7x's
        # second TensorCore participates; costs ~0.35us extra on v5e/v6e.
        TB = _round_up(pl.cdiv(B, 2), 8)
    pb = pl.cdiv(B, TB) * TB

    if pb != B or kf != F:
        x = jnp.pad(x, ((0, pb - B), (0, kf - F)))

    folded = fold_params(params, num_classes, kf)
    w1, b1, w2, b2, w3, b3, wo, bo = folded

    grid = (pb // TB, kf // TK)

    def resident(shape):              # same block every grid step
        return pl.BlockSpec(shape, lambda i, k: (0, 0))

    in_specs = [
        pl.BlockSpec((TB, TK), lambda i, k: (i, k)),   # x: batch x K tiled
        pl.BlockSpec((TK, H1), lambda i, k: (k, 0)),   # w1: K tiled
        resident(b1.shape),
        resident(w2.shape), resident(b2.shape),
        resident(w3.shape), resident(b3.shape),
        resident(wo.shape), resident(bo.shape),
    ]
    out_specs = pl.BlockSpec((TB, PADDED_OUT), lambda i, k: (i, 0))

    # --- scoped VMEM budget (default pipeline double-buffers every input) ---
    bytes_x = 2 * TB * TK * 4
    bytes_w1 = 2 * TK * H1 * 2
    bytes_wrest = 2 * 2 * (H1 * H2 + H2 * H3 + H3 * PADDED_OUT)
    bytes_bias = 2 * 4 * (H1 + H2 + H3 + PADDED_OUT)
    bytes_out = 2 * TB * PADDED_OUT * 4
    bytes_acc = TB * H1 * 4
    vmem_need = (bytes_x + bytes_w1 + bytes_wrest + bytes_bias
                 + bytes_out + bytes_acc)
    vmem_limit = int(min(max(2 * vmem_need, 16 * 2**20), 64 * 2**20))

    flops = 2 * pb * (kf * H1 + H1 * H2 + H2 * H3 + H3 * PADDED_OUT)
    bytes_accessed = (x.size * 4
                      + (w1.size + w2.size + w3.size + wo.size) * 2
                      + (b1.size + b2.size + b3.size + bo.size) * 4
                      + pb * PADDED_OUT * 4)
    cost = pl.CostEstimate(flops=flops, transcendentals=0,
                           bytes_accessed=int(bytes_accessed))

    out = pl.pallas_call(
        mlp_kernel,
        out_shape=jax.ShapeDtypeStruct((pb, PADDED_OUT), jnp.float32),
        grid_spec=pltpu.PrefetchScalarGridSpec(
            num_scalar_prefetch=0,
            grid=grid,
            in_specs=in_specs,
            out_specs=out_specs,
            scratch_shapes=[pltpu.VMEM((TB, H1), jnp.float32)],
        ),
        compiler_params=pltpu.CompilerParams(
            dimension_semantics=("parallel", "arbitrary"),
            vmem_limit_bytes=vmem_limit),
        cost_estimate=cost,
    )(x, *folded)

    return out[:B, :num_classes]


def init_params(key, input_size, num_classes=7):
    """Deterministic init mirroring nn.Linear / nn.BatchNorm1d shapes.
    Linear weights stored already transposed to [in, out]."""
    def linear(k, fan_in, fan_out):
        bound = 1.0 / (fan_in ** 0.5)
        kw, kb = jax.random.split(k)
        w = jax.random.uniform(kw, (fan_in, fan_out), jnp.float32, -bound, bound)
        b = jax.random.uniform(kb, (1, fan_out), jnp.float32, -bound, bound)
        return w, b

    def bn(dim):
        return (jnp.ones((1, dim), jnp.float32),    # gamma
                jnp.zeros((1, dim), jnp.float32),   # beta
                jnp.zeros((1, dim), jnp.float32),   # running_mean
                jnp.ones((1, dim), jnp.float32))    # running_var

    k1, k2, k3, k4 = jax.random.split(key, 4)
    params = {}
    params["w1"], params["b1"] = linear(k1, input_size, H1)
    params["g1"], params["be1"], params["m1"], params["v1"] = bn(H1)
    params["w2"], params["b2"] = linear(k2, H1, H2)
    params["g2"], params["be2"], params["m2"], params["v2"] = bn(H2)
    params["w3"], params["b3"] = linear(k3, H2, H3)
    params["g3"], params["be3"], params["m3"], params["v3"] = bn(H3)
    params["wo"], params["bo"] = linear(k4, H3, num_classes)
    return params


def reference_forward(x, p):
    """Pure-JAX f32 reference (eval mode, un-folded BN) for validation."""
    def blk(h, w, b, g, be, m, v):
        y = h @ w + b
        y = (y - m) * jax.lax.rsqrt(v + EPS) * g + be
        return jnp.maximum(y, 0.0)
    h = blk(x, p["w1"], p["b1"], p["g1"], p["be1"], p["m1"], p["v1"])
    h = blk(h, p["w2"], p["b2"], p["g2"], p["be2"], p["m2"], p["v2"])
    h = blk(h, p["w3"], p["b3"], p["g3"], p["be3"], p["m3"], p["v3"])
    return h @ p["wo"] + p["bo"]


if __name__ == "__main__":
    key = jax.random.PRNGKey(0)
    k_x, k_p, k_x2, k_p2 = jax.random.split(key, 4)

    # Case 1: tiny batch / small feature vector (no padding, single grid step).
    batch, input_size, num_classes = 8, 64, 7
    x = jax.random.normal(k_x, (batch, input_size), jnp.float32)
    params = init_params(k_p, input_size, num_classes)

    logits = jax.block_until_ready(
        audio_classification_forward(x, params, num_classes))
    assert logits.shape == (batch, num_classes), logits.shape
    assert bool(jnp.all(jnp.isfinite(logits)))
    ref = reference_forward(x, params)
    assert bool(jnp.allclose(logits, ref, atol=5e-2, rtol=5e-2)), \
        float(jnp.max(jnp.abs(logits - ref)))

    # Case 2: exercises fc1 K-tiling (F > MAX_TK), K padding and batch padding.
    batch2, input2 = 20, 1200
    x2 = jax.random.normal(k_x2, (batch2, input2), jnp.float32)
    params2 = init_params(k_p2, input2, num_classes)

    logits2 = jax.block_until_ready(
        audio_classification_forward(x2, params2, num_classes))
    assert logits2.shape == (batch2, num_classes), logits2.shape
    ref2 = reference_forward(x2, params2)
    assert bool(jnp.allclose(logits2, ref2, atol=5e-2, rtol=5e-2)), \
        float(jnp.max(jnp.abs(logits2 - ref2)))

    print("KERNEL_OK")
</pallas_src>

<mosaic_0001>
module attributes {stable_mosaic.version = 11 : i64} {
  func.func @mlp_kernel(%arg0: i32, %arg1: i32, %arg2: memref<8x64xf32, #tpu.memory_space<vmem>>, %arg3: memref<64x512xbf16, #tpu.memory_space<vmem>>, %arg4: memref<1x512xf32, #tpu.memory_space<vmem>>, %arg5: memref<512x256xbf16, #tpu.memory_space<vmem>>, %arg6: memref<1x256xf32, #tpu.memory_space<vmem>>, %arg7: memref<256x64xbf16, #tpu.memory_space<vmem>>, %arg8: memref<1x64xf32, #tpu.memory_space<vmem>>, %arg9: memref<64x128xbf16, #tpu.memory_space<vmem>>, %arg10: memref<1x128xf32, #tpu.memory_space<vmem>>, %arg11: memref<8x128xf32, #tpu.memory_space<vmem>>, %arg12: memref<8x512xf32, #tpu.memory_space<vmem>>) attributes {dimension_semantics = [#tpu.dimension_semantics<parallel>, #tpu.dimension_semantics<arbitrary>], iteration_bounds = array<i64: 1, 1>, scalar_prefetch = 0 : i64, scratch_operands = 1 : i64, tpu.core_type = #tpu.core_type<tc>, window_params = [{transform_indices = @transform_0, window_bounds = array<i64: 8, 64>}, {transform_indices = @transform_1, window_bounds = array<i64: 64, 512>}, {pipeline_mode = #tpu.pipeline_mode<synchronous>, transform_indices = @transform_2, window_bounds = array<i64: 1, 512>}, {pipeline_mode = #tpu.pipeline_mode<synchronous>, transform_indices = @transform_3, window_bounds = array<i64: 512, 256>}, {pipeline_mode = #tpu.pipeline_mode<synchronous>, transform_indices = @transform_4, window_bounds = array<i64: 1, 256>}, {pipeline_mode = #tpu.pipeline_mode<synchronous>, transform_indices = @transform_5, window_bounds = array<i64: 256, 64>}, {pipeline_mode = #tpu.pipeline_mode<synchronous>, transform_indices = @transform_6, window_bounds = array<i64: 1, 64>}, {pipeline_mode = #tpu.pipeline_mode<synchronous>, transform_indices = @transform_7, window_bounds = array<i64: 64, 128>}, {pipeline_mode = #tpu.pipeline_mode<synchronous>, transform_indices = @transform_8, window_bounds = array<i64: 1, 128>}, {transform_indices = @transform_9, window_bounds = array<i64: 8, 128>}]} {
    %c0_i32 = arith.constant 0 : i32
    %0 = arith.cmpi eq, %arg1, %c0_i32 : i32
    %1 = arith.extui %0 : i1 to i32
    %c0_i32_0 = arith.constant 0 : i32
    %2 = arith.cmpi ne, %1, %c0_i32_0 : i32
    scf.if %2 {
      %cst_10 = arith.constant 0.000000e+00 : f32
      %13 = vector.broadcast %cst_10 : f32 to vector<8x512xf32>
      %c0_11 = arith.constant 0 : index
      %c0_12 = arith.constant 0 : index
      %14 = vector.load %arg12[%c0_11, %c0_12] : memref<8x512xf32, #tpu.memory_space<vmem>>, vector<8x512xf32>
      tpu.vector_store %arg12[%c0_11, %c0_12], %13 {strides = array<i32>} : memref<8x512xf32, #tpu.memory_space<vmem>>, vector<8x512xf32>,
    } else {
    }
    %c0 = arith.constant 0 : index
    %c0_1 = arith.constant 0 : index
    %3 = vector.load %arg12[%c0, %c0_1] : memref<8x512xf32, #tpu.memory_space<vmem>>, vector<8x512xf32>
    %c0_2 = arith.constant 0 : index
    %c0_3 = arith.constant 0 : index
    %4 = vector.load %arg2[%c0_2, %c0_3] : memref<8x64xf32, #tpu.memory_space<vmem>>, vector<8x64xf32>
    %5 = arith.truncf %4 : vector<8x64xf32> to vector<8x64xbf16>
    %c0_4 = arith.constant 0 : index
    %c0_5 = arith.constant 0 : index
    %6 = vector.load %arg3[%c0_4, %c0_5] : memref<64x512xbf16, #tpu.memory_space<vmem>>, vector<64x512xbf16>
    %cst = arith.constant dense<0.000000e+00> : vector<8x512xf32>
    %7 = tpu.matmul %5, %6, %cst {dimension_numbers = #tpu.dot_dimension_numbers<[1], [0], [0], [1], [0, 0, 1, 1], [], []>} : vector<8x64xbf16>, vector<64x512xbf16>, vector<8x512xf32> -> vector<8x512xf32>
    %8 = arith.addf %3, %7 : vector<8x512xf32>
    %c0_6 = arith.constant 0 : index
    %c0_7 = arith.constant 0 : index
    %9 = vector.load %arg12[%c0_6, %c0_7] : memref<8x512xf32, #tpu.memory_space<vmem>>, vector<8x512xf32>
    tpu.vector_store %arg12[%c0_6, %c0_7], %8 {strides = array<i32>} : memref<8x512xf32, #tpu.memory_space<vmem>>, vector<8x512xf32>,
    %c0_i32_8 = arith.constant 0 : i32
    %10 = arith.cmpi eq, %arg1, %c0_i32_8 : i32
    %11 = arith.extui %10 : i1 to i32
    %c0_i32_9 = arith.constant 0 : i32
    %12 = arith.cmpi ne, %11, %c0_i32_9 : i32
    scf.if %12 {
      %c0_10 = arith.constant 0 : index
      %c0_11 = arith.constant 0 : index
      %13 = vector.load %arg12[%c0_10, %c0_11] : memref<8x512xf32, #tpu.memory_space<vmem>>, vector<8x512xf32>
      %c0_12 = arith.constant 0 : index
      %c0_13 = arith.constant 0 : index
      %14 = vector.load %arg4[%c0_12, %c0_13] : memref<1x512xf32, #tpu.memory_space<vmem>>, vector<1x512xf32>
      %15 = vector.broadcast %14 : vector<1x512xf32> to vector<8x512xf32>
      %16 = arith.addf %13, %15 : vector<8x512xf32>
      %cst_14 = arith.constant 0.000000e+00 : f32
      %17 = vector.broadcast %cst_14 : f32 to vector<8x512xf32>
      %18 = arith.maximumf %16, %17 : vector<8x512xf32>
      %19 = arith.truncf %18 : vector<8x512xf32> to vector<8x512xbf16>
      %c0_15 = arith.constant 0 : index
      %c0_16 = arith.constant 0 : index
      %20 = vector.load %arg5[%c0_15, %c0_16] : memref<512x256xbf16, #tpu.memory_space<vmem>>, vector<512x256xbf16>
      %cst_17 = arith.constant dense<0.000000e+00> : vector<8x256xf32>
      %21 = tpu.matmul %19, %20, %cst_17 {dimension_numbers = #tpu.dot_dimension_numbers<[1], [0], [0], [1], [0, 0, 1, 1], [], []>} : vector<8x512xbf16>, vector<512x256xbf16>, vector<8x256xf32> -> vector<8x256xf32>
      %c0_18 = arith.constant 0 : index
      %c0_19 = arith.constant 0 : index
      %22 = vector.load %arg6[%c0_18, %c0_19] : memref<1x256xf32, #tpu.memory_space<vmem>>, vector<1x256xf32>
      %23 = vector.broadcast %22 : vector<1x256xf32> to vector<8x256xf32>
      %24 = arith.addf %21, %23 : vector<8x256xf32>
      %cst_20 = arith.constant 0.000000e+00 : f32
      %25 = vector.broadcast %cst_20 : f32 to vector<8x256xf32>
      %26 = arith.maximumf %24, %25 : vector<8x256xf32>
      %27 = arith.truncf %26 : vector<8x256xf32> to vector<8x256xbf16>
      %c0_21 = arith.constant 0 : index
      %c0_22 = arith.constant 0 : index
      %28 = vector.load %arg7[%c0_21, %c0_22] : memref<256x64xbf16, #tpu.memory_space<vmem>>, vector<256x64xbf16>
      %cst_23 = arith.constant dense<0.000000e+00> : vector<8x64xf32>
      %29 = tpu.matmul %27, %28, %cst_23 {dimension_numbers = #tpu.dot_dimension_numbers<[1], [0], [0], [1], [0, 0, 1, 1], [], []>} : vector<8x256xbf16>, vector<256x64xbf16>, vector<8x64xf32> -> vector<8x64xf32>
      %c0_24 = arith.constant 0 : index
      %c0_25 = arith.constant 0 : index
      %30 = vector.load %arg8[%c0_24, %c0_25] : memref<1x64xf32, #tpu.memory_space<vmem>>, vector<1x64xf32>
      %31 = vector.broadcast %30 : vector<1x64xf32> to vector<8x64xf32>
      %32 = arith.addf %29, %31 : vector<8x64xf32>
      %cst_26 = arith.constant 0.000000e+00 : f32
      %33 = vector.broadcast %cst_26 : f32 to vector<8x64xf32>
      %34 = arith.maximumf %32, %33 : vector<8x64xf32>
      %35 = arith.truncf %34 : vector<8x64xf32> to vector<8x64xbf16>
      %c0_27 = arith.constant 0 : index
      %c0_28 = arith.constant 0 : index
      %36 = vector.load %arg9[%c0_27, %c0_28] : memref<64x128xbf16, #tpu.memory_space<vmem>>, vector<64x128xbf16>
      %cst_29 = arith.constant dense<0.000000e+00> : vector<8x128xf32>
      %37 = tpu.matmul %35, %36, %cst_29 {dimension_numbers = #tpu.dot_dimension_numbers<[1], [0], [0], [1], [0, 0, 1, 1], [], []>} : vector<8x64xbf16>, vector<64x128xbf16>, vector<8x128xf32> -> vector<8x128xf32>
      %c0_30 = arith.constant 0 : index
      %c0_31 = arith.constant 0 : index
      %38 = vector.load %arg10[%c0_30, %c0_31] : memref<1x128xf32, #tpu.memory_space<vmem>>, vector<1x128xf32>
      %39 = vector.broadcast %38 : vector<1x128xf32> to vector<8x128xf32>
      %40 = arith.addf %37, %39 : vector<8x128xf32>
      %c0_32 = arith.constant 0 : index
      %c0_33 = arith.constant 0 : index
      %41 = vector.load %arg11[%c0_32, %c0_33] : memref<8x128xf32, #tpu.memory_space<vmem>>, vector<8x128xf32>
      tpu.vector_store %arg11[%c0_32, %c0_33], %40 {strides = array<i32>} : memref<8x128xf32, #tpu.memory_space<vmem>>, vector<8x128xf32>,
    } else {
    }
    return
  }
  func.func @transform_0(%arg0: i32, %arg1: i32) -> (i32, i32) {
    %c0_i32 = arith.constant 0 : i32
    return %arg0, %arg1 : i32, i32
  }
  func.func @transform_1(%arg0: i32, %arg1: i32) -> (i32, i32) {
    %c0_i32 = arith.constant 0 : i32
    %c0_i32_0 = arith.constant 0 : i32
    return %arg1, %c0_i32 : i32, i32
  }
  func.func @transform_2(%arg0: i32, %arg1: i32) -> (i32, i32) {
    %c0_i32 = arith.constant 0 : i32
    %c0_i32_0 = arith.constant 0 : i32
    %c0_i32_1 = arith.constant 0 : i32
    return %c0_i32, %c0_i32_0 : i32, i32
  }
  func.func @transform_3(%arg0: i32, %arg1: i32) -> (i32, i32) {
    %c0_i32 = arith.constant 0 : i32
    %c0_i32_0 = arith.constant 0 : i32
    %c0_i32_1 = arith.constant 0 : i32
    return %c0_i32, %c0_i32_0 : i32, i32
  }
  func.func @transform_4(%arg0: i32, %arg1: i32) -> (i32, i32) {
    %c0_i32 = arith.constant 0 : i32
    %c0_i32_0 = arith.constant 0 : i32
    %c0_i32_1 = arith.constant 0 : i32
    return %c0_i32, %c0_i32_0 : i32, i32
  }
  func.func @transform_5(%arg0: i32, %arg1: i32) -> (i32, i32) {
    %c0_i32 = arith.constant 0 : i32
    %c0_i32_0 = arith.constant 0 : i32
    %c0_i32_1 = arith.constant 0 : i32
    return %c0_i32, %c0_i32_0 : i32, i32
  }
  func.func @transform_6(%arg0: i32, %arg1: i32) -> (i32, i32) {
    %c0_i32 = arith.constant 0 : i32
    %c0_i32_0 = arith.constant 0 : i32
    %c0_i32_1 = arith.constant 0 : i32
    return %c0_i32, %c0_i32_0 : i32, i32
  }
  func.func @transform_7(%arg0: i32, %arg1: i32) -> (i32, i32) {
    %c0_i32 = arith.constant 0 : i32
    %c0_i32_0 = arith.constant 0 : i32
    %c0_i32_1 = arith.constant 0 : i32
    return %c0_i32, %c0_i32_0 : i32, i32
  }
  func.func @transform_8(%arg0: i32, %arg1: i32) -> (i32, i32) {
    %c0_i32 = arith.constant 0 : i32
    %c0_i32_0 = arith.constant 0 : i32
    %c0_i32_1 = arith.constant 0 : i32
    return %c0_i32, %c0_i32_0 : i32, i32
  }
  func.func @transform_9(%arg0: i32, %arg1: i32) -> (i32, i32) {
    %c0_i32 = arith.constant 0 : i32
    %c0_i32_0 = arith.constant 0 : i32
    return %arg0, %c0_i32 : i32, i32
  }
}

</mosaic_0001>

<bundles_post_ra>
// kernel: tpu_custom_call.1
= control target key start
LH: loop header
LB: loop body
LE: loop exit
PB: predicated region body
PF: predicated region fallthrough
CT: control target
= control target key end

     0   :  { %14 = vsyncpa [#allocation4], 0  ;;  %s1616_s0 = inlined_call_operand.vmem [shape: f32[8,64], index: 0, kind: input, shape index: {}]   ;;  %s1617_s1 = inlined_call_operand.vmem [shape: bf16[64,512], index: 1, kind: input, shape index: {}]   ;;  %s1618_s2 = inlined_call_operand.vmem [shape: f32[1,512], index: 2, kind: input, shape index: {}]   ;;  %s1619_s3 = inlined_call_operand.hbm [shape: bf16[512,256], index: 3, kind: input, shape index: {}]   ;;  %s1620_s4 = inlined_call_operand.vmem [shape: f32[1,256], index: 4, kind: input, shape index: {}]   ;;  %s1621_s5 = inlined_call_operand.vmem [shape: bf16[256,64], index: 5, kind: input, shape index: {}]   ;;  %s1622_s6 = inlined_call_operand.vmem [shape: f32[1,64], index: 6, kind: input, shape index: {}]   ;;  %s1623_s7 = inlined_call_operand.vmem [shape: bf16[64,128], index: 7, kind: input, shape index: {}]   ;;  %s1624_s8 = inlined_call_operand.vmem [shape: f32[1,128], index: 8, kind: input, shape index: {}]   ;;  %s1625_s9 = inlined_call_operand.hbm [shape: f32[8,128], index: 9, kind: output, shape index: {}]  }
   0x1   :  { %15 = vsyncpa [#allocation5], 0  ;;  %s1395_s30 = smov [#allocation3]   ;;  %s1347_s13 = scalar_lea.hbm %s1619_s3, 8192 }
   0x2   :  { %s27_s10 = sshll.u32 %s1395_s30, 4  ;;  %p1348_p0 = scmp.ne.s32.totalorder %s1619_s3, %s1347_s13  ;;  %s28_s10 = int_to_ptr.vmem [resolvable:$true] %s27_s10 }
   0x3   :  { %p1351_p1 = scmp.lt.u32.totalorder %s1347_s13, %s1619_s3 }
   0x5   :  { %p1353_p2 = pnand %p1351_p1, %p1348_p0 }
   0x7   :  { %1356 = shalt.err (!%p1353_p2)
}
   0x8   :  { %s1357_s18 = scalar_lea.vmem %s28_s10, 8192  ;;  %p1362_p4 = scmp.lt.s32.totalorder %s28_s10, %s28_s10 }
   0x9   :  { %p1358_p3 = scmp.ne.s32.totalorder %s28_s10, %s1357_s18  ;;  %p1363_p5 = scmp.lt.s32.totalorder %s1357_s18, %s1357_s18 }
   0xb   :  { %p1364_p6 = por %p1363_p5, %p1362_p4 }
   0xd   :  { %p1365_p7 = pnand %p1364_p6, %p1358_p3 }
   0xf   :  { %1368 = shalt.err (!%p1365_p7)
}
  0x10   :  { %s1396_s19 = smov 128   ;;  %s1397_s20 = smov 8  }
  0x11   :  { %33 = dma.hbm_to_vmem [thread:$0]  %s1619_s3, 8192, %s28_s10, [#allocation4], %s1396_s19, %s1396_s19, %s1397_s20  }
  0x12   :  { %1391 = dma.done.wait [#allocation4], 8192  }
  0x13   :  { %1392 = vsyncadd [#allocation4], 4294959104  ;;  %v1398_v0 = vmov 0   ;;  %v1207_v1 = vld [vmem:[%s1617_s1 + $0x4] ss:$16 sps:$4 sm:$0xff]   ;;  %vm158_vm0 = vcmask 523264   ;;  %v261_v52 = vlaneseq }
  0x14   :  { %194 = vmatprep.mubr.bf16.mxu1 %v1398_v0  ;;  %v1209_v2 = vld [vmem:[%s1617_s1] ss:$16 sps:$4 sm:$0xff]   ;;  %162 = vmatprep.subr.bf16.mxu1 %v1207_v1  ;;  %v1210_v3 = vld [vmem:[%s1617_s1 + $0x24] ss:$16 sps:$4 sm:$0xff]   ;;  %v1221_v10 = vld [vmem:[%s1617_s1 + $0xc] ss:$16 sps:$4 sm:$0xff]  }
  0x15   :  { %163 = vmatpush1.bf16.msra.mxu1 %v1209_v2  ;;  %v1212_v4 = vld [vmem:[%s1617_s1 + $0x20] ss:$16 sps:$4 sm:$0xff]   ;;  %v1213_v5 = vld [vmem:[%s1617_s1 + $0x44] ss:$16 sps:$4 sm:$0xff]   ;;  %v1219_v15 = vld [vmem:[%s1617_s1 + $0x8] ss:$16 sps:$4 sm:$0xff]  }
  0x16   :  { %164 = vmatprep.subr.bf16.mxu1 %v1210_v3  ;;  %v1215_v6 = vld [vmem:[%s1617_s1 + $0x40] ss:$16 sps:$4 sm:$0xff]   ;;  %v1216_v7 = vld [vmem:[%s1617_s1 + $0x64] ss:$16 sps:$4 sm:$0xff]   ;;  %v1224_v17 = vld [vmem:[%s1617_s1 + $0x2c] ss:$16 sps:$4 sm:$0xff]  }
  0x17   :  { %v1218_v8 = vld [vmem:[%s1617_s1 + $0x60] ss:$16 sps:$4 sm:$0xff]   ;;  %v1231_v11 = vld [vmem:[#allocation3 + $0x4] ss:$8 sps:$4 sm:$0xff]   ;;  %v1234_v13 = vld [vmem:[#allocation3 + $0x14] ss:$8 sps:$4 sm:$0xff]  }
  0x18   :  { %v60_v9 = vld [vmem:[%s1616_s0] sm:$0xff]  ;;  %689 = vmatprep.subr.bf16.mxu0 %v1231_v11  ;;  %v1236_v16 = vld [vmem:[#allocation3 + $0x10] ss:$8 sps:$4 sm:$0xff]   ;;  %v1240_v21 = vld [vmem:[#allocation3 + $0x34] ss:$8 sps:$4 sm:$0xff]   ;;  %v1517_v53 = vshrl.u32 %v261_v52, 7 }
  0x19   :  { %165 = vmatpush1.bf16.msra.mxu1 %v1212_v4  ;;  %v1233_v12 = vld [vmem:[#allocation3] ss:$8 sps:$4 sm:$0xff]   ;;  %v61_v14 = vpack.c.bf16 %v60_v9, %v60_v9  ;;  %v1237_v18 = vld [vmem:[#allocation3 + $0x24] ss:$8 sps:$4 sm:$0xff]   ;;  %v1242_v24 = vld [vmem:[#allocation3 + $0x30] ss:$8 sps:$4 sm:$0xff]  }
  0x1a   :  { %166 = vmatprep.subr.bf16.mxu1 %v1213_v5  ;;  %690 = vmatpush1.bf16.msra.mxu0 %v1233_v12  ;;  %v1222_v19 = vld [vmem:[%s1617_s1 + $0x28] ss:$16 sps:$4 sm:$0xff]   ;;  %v1227_v22 = vld [vmem:[%s1617_s1 + $0x4c] ss:$16 sps:$4 sm:$0xff]   ;;  %v271_v54 = vsub.s32 2, %v1517_v53  ;;  %v1327_v57 = vld [vmem:[%s1621_s5 + $0x40] sm:$0xff]  }
  0x1b   :  { %691 = vmatprep.subr.bf16.mxu0 %v1234_v13  ;;  %v1239_v20 = vld [vmem:[#allocation3 + $0x20] ss:$8 sps:$4 sm:$0xff]   ;;  %v1243_v25 = vld [vmem:[#allocation3 + $0x44] ss:$8 sps:$4 sm:$0xff]   ;;  %v1246_v29 = vld [vmem:[#allocation3 + $0x54] ss:$8 sps:$4 sm:$0xff]  }
  0x1c   :  { %v1225_v23 = vld [vmem:[%s1617_s1 + $0x48] ss:$16 sps:$4 sm:$0xff]   ;;  %v1230_v26 = vld [vmem:[%s1617_s1 + $0x6c] ss:$16 sps:$4 sm:$0xff]   ;;  %v259_v55 = vld [vmem:[%s1618_s2] sm:$0xf] }
  0x1d   :  { %167 = vmatpush1.bf16.msra.mxu1 %v1215_v6  ;;  %v1228_v27 = vld [vmem:[%s1617_s1 + $0x68] ss:$16 sps:$4 sm:$0xff]   ;;  %v1249_v31 = vld [vmem:[#allocation3 + $0x64] ss:$8 sps:$4 sm:$0xff]   ;;  %v1252_v33 = vld [vmem:[#allocation3 + $0x74] ss:$8 sps:$4 sm:$0xff]   ;;  %v272_v56 = vrot.slane %v259_v55, %v271_v54 }
  0x1e   :  { %168 = vmatprep.subr.bf16.mxu1 %v1216_v7  ;;  %692 = vmatpush1.bf16.msra.mxu0 %v1236_v16  ;;  %v1245_v28 = vld [vmem:[#allocation3 + $0x40] ss:$8 sps:$4 sm:$0xff]   ;;  %v1248_v30 = vld [vmem:[#allocation3 + $0x50] ss:$8 sps:$4 sm:$0xff]   ;;  %v1255_v35 = vld [vmem:[#allocation3 + $0x84] ss:$8 sps:$4 sm:$0xff]  }
  0x1f   :  { %693 = vmatprep.subr.bf16.mxu0 %v1237_v18  ;;  %v1251_v32 = vld [vmem:[#allocation3 + $0x60] ss:$8 sps:$4 sm:$0xff]   ;;  %v1254_v34 = vld [vmem:[#allocation3 + $0x70] ss:$8 sps:$4 sm:$0xff]   ;;  %v1258_v37 = vld [vmem:[#allocation3 + $0x94] ss:$8 sps:$4 sm:$0xff]  }
  0x20   :  { %v1257_v36 = vld [vmem:[#allocation3 + $0x80] ss:$8 sps:$4 sm:$0xff]   ;;  %v1260_v38 = vld [vmem:[#allocation3 + $0x90] ss:$8 sps:$4 sm:$0xff]   ;;  %v1261_v39 = vld [vmem:[#allocation3 + $0xa4] ss:$8 sps:$4 sm:$0xff]  }
  0x21   :  { %169 = vmatpush1.bf16.msra.mxu1 %v1218_v8  ;;  %v1263_v40 = vld [vmem:[#allocation3 + $0xa0] ss:$8 sps:$4 sm:$0xff]   ;;  %v1264_v41 = vld [vmem:[#allocation3 + $0xb4] ss:$8 sps:$4 sm:$0xff]   ;;  %v1266_v42 = vld [vmem:[#allocation3 + $0xb0] ss:$8 sps:$4 sm:$0xff]  }
  0x22   :  { %203 = vmatprep.subr.bf16.mxu1 %v1221_v10  ;;  %694 = vmatpush1.bf16.msra.mxu0 %v1239_v20  ;;  %v1267_v43 = vld [vmem:[#allocation3 + $0xc4] ss:$8 sps:$4 sm:$0xff]   ;;  %v1269_v44 = vld [vmem:[#allocation3 + $0xc0] ss:$8 sps:$4 sm:$0xff]   ;;  %v1270_v45 = vld [vmem:[#allocation3 + $0xd4] ss:$8 sps:$4 sm:$0xff]  }
  0x23   :  { %695 = vmatprep.subr.bf16.mxu0 %v1240_v21  ;;  %v1272_v46 = vld [vmem:[#allocation3 + $0xd0] ss:$8 sps:$4 sm:$0xff]   ;;  %v1273_v47 = vld [vmem:[#allocation3 + $0xe4] ss:$8 sps:$4 sm:$0xff]   ;;  %v1275_v48 = vld [vmem:[#allocation3 + $0xe0] ss:$8 sps:$4 sm:$0xff]  }
  0x24   :  { %1066 = vmatmul.mubr.msk.bf16.vlgmr.msra.gmra.mrb[0].mxu1 %vm158_vm0, %v61_v14  ;;  %v1276_v49 = vld [vmem:[#allocation3 + $0xf4] ss:$8 sps:$4 sm:$0xff]   ;;  %v1278_v50 = vld [vmem:[#allocation3 + $0xf0] ss:$8 sps:$4 sm:$0xff]   ;;  %v1281_v51 = vld [vmem:[#allocation3 + $0x104] ss:$8 sps:$4 sm:$0xff]  }
  0x25   :  { %204 = vmatpush1.bf16.msra.mxu1 %v1219_v15  ;;  %235 = vmatprep.mubr.bf16.mxu1 %v1398_v0  ;;  %v1328_v58 = vld [vmem:[%s1621_s5] sm:$0xff]   ;;  %v1329_v59 = vld [vmem:[%s1621_s5 + $0x48] sm:$0xff]   ;;  %v1331_v61 = vld [vmem:[%s1621_s5 + $0x50] sm:$0xff]   ;;  %v263_v5 = vsub.s32 0, %v1517_v53  ;;  %v267_v6 = vsub.s32 1, %v1517_v53  ;;  %vm1400_vm1 = vmmov 0  }
  0x26   :  { %205 = vmatprep.subr.bf16.mxu1 %v1224_v17  ;;  %696 = vmatpush1.bf16.msra.mxu0 %v1242_v24  ;;  %v1330_v60 = vld [vmem:[%s1621_s5 + $0x8] sm:$0xff]   ;;  %v1332_v62 = vld [vmem:[%s1621_s5 + $0x10] sm:$0xff]   ;;  %v1333_v63 = vld [vmem:[%s1621_s5 + $0x58] sm:$0xff]  }
  0x27   :  { %697 = vmatprep.subr.bf16.mxu0 %v1243_v25  ;;  %v1334_v0 = vld [vmem:[%s1621_s5 + $0x18] sm:$0xff]   ;;  %v1335_v1 = vld [vmem:[%s1621_s5 + $0x60] sm:$0xff]   ;;  %v1337_v3 = vld [vmem:[%s1621_s5 + $0x68] sm:$0xff]   ;;  %v264_v7 = vrot.slane %v259_v55, %v263_v5  ;;  %v268_v8 = vrot.slane %v259_v55, %v267_v6 }
  0x28   :  { %v1336_v2 = vld [vmem:[%s1621_s5 + $0x20] sm:$0xff]   ;;  %v1338_v4 = vld [vmem:[%s1621_s5 + $0x28] sm:$0xff]   ;;  %v1284_v20 = vld [vmem:[#allocation3 + $0x114] ss:$8 sps:$4 sm:$0xff]  }
  0x29   :  { %206 = vmatpush1.bf16.msra.mxu1 %v1222_v19  ;;  %v1279_v18 = vld [vmem:[#allocation3 + $0x100] ss:$8 sps:$4 sm:$0xff]   ;;  %v1282_v21 = vld [vmem:[#allocation3 + $0x110] ss:$8 sps:$4 sm:$0xff]   ;;  %v1317_v52 = vld [vmem:[#allocation3 + $0x1c4] ss:$8 sps:$4 sm:$0xff]  }
  0x2a   :  { %207 = vmatprep.subr.bf16.mxu1 %v1227_v22  ;;  %698 = vmatpush1.bf16.msra.mxu0 %v1245_v28  ;;  %v275_v22 = vsub.s32 3, %v1517_v53  ;;  %v1285_v24 = vld [vmem:[#allocation3 + $0x120] ss:$8 sps:$4 sm:$0xff]  }
  0x2b   :  { %699 = vmatprep.subr.bf16.mxu0 %v1246_v29  ;;  %v1315_v54 = vld [vmem:[#allocation3 + $0x1c0] ss:$8 sps:$4 sm:$0xff]  }
  0x2c   :  { %v276_v25 = vrot.slane %v259_v55, %v275_v22  ;;  %v1320_v55 = vld [vmem:[#allocation3 + $0x1d4] ss:$8 sps:$4 sm:$0xff]   ;;  %v1344_v53 = vld [vmem:[%s1623_s7 + $0x8] sm:$0xff]  }
  0x2d   :  { %208 = vmatpush1.bf16.msra.mxu1 %v1225_v23  ;;  %v1287_v23 = vld [vmem:[#allocation3 + $0x124] ss:$8 sps:$4 sm:$0xff]  }
  0x2e   :  { %209 = vmatprep.subr.bf16.mxu1 %v1230_v26  ;;  %700 = vmatpush1.bf16.msra.mxu0 %v1248_v30  ;;  %v1290_v26 = vld [vmem:[#allocation3 + $0x134] ss:$8 sps:$4 sm:$0xff]   ;;  %v1288_v30 = vld [vmem:[#allocation3 + $0x130] ss:$8 sps:$4 sm:$0xff]  }
  0x2f   :  { %701 = vmatprep.subr.bf16.mxu0 %v1249_v31 }
  0x31   :  { %210 = vmatpush1.bf16.msra.mxu1 %v1228_v27 }
  0x32   :  { %702 = vmatpush1.bf16.msra.mxu0 %v1251_v32  ;;  %1155 = vmatprep.subr.bf16.mxu1 %v1327_v57  ;;  %v1323_v57 = vld [vmem:[#allocation3 + $0x1e4] ss:$8 sps:$4 sm:$0xff]  }
  0x33   :  { %703 = vmatprep.subr.bf16.mxu0 %v1252_v33  ;;  %v1293_v33 = vld [vmem:[#allocation3 + $0x144] ss:$8 sps:$4 sm:$0xff]  }
  0x34   :  { %1067 = vmatmul.mubr.msk.bf16.vlgmr.msra.gmra.mrb[4].mxu1 %vm158_vm0, %v61_v14 }
  0x35   :  { %1156 = vmatpush3.bf16.msra.mxu1 %v1328_v58  ;;  %v1321_v58 = vld [vmem:[#allocation3 + $0x1e0] ss:$8 sps:$4 sm:$0xff]  }
  0x36   :  { %704 = vmatpush1.bf16.msra.mxu0 %v1254_v34  ;;  %1157 = vmatprep.subr.bf16.mxu1 %v1329_v59  ;;  %v1326_v59 = vld [vmem:[#allocation3 + $0x1f4] ss:$8 sps:$4 sm:$0xff]  }
  0x37   :  { %705 = vmatprep.subr.bf16.mxu0 %v1255_v35 }
  0x39   :  { %1158 = vmatpush3.bf16.msra.mxu1 %v1330_v60  ;;  %v1324_v60 = vld [vmem:[#allocation3 + $0x1f0] ss:$8 sps:$4 sm:$0xff]  }
  0x3a   :  { %706 = vmatpush1.bf16.msra.mxu0 %v1257_v36  ;;  %1159 = vmatprep.subr.bf16.mxu1 %v1331_v61  ;;  %v1291_v36 = vld [vmem:[#allocation3 + $0x140] ss:$8 sps:$4 sm:$0xff]  }
  0x3b   :  { %707 = vmatprep.subr.bf16.mxu0 %v1258_v37 }
  0x3d   :  { %1160 = vmatpush3.bf16.msra.mxu1 %v1332_v62 }
  0x3e   :  { %708 = vmatpush1.bf16.msra.mxu0 %v1260_v38  ;;  %1161 = vmatprep.subr.bf16.mxu1 %v1333_v63  ;;  %v1296_v38 = vld [vmem:[#allocation3 + $0x154] ss:$8 sps:$4 sm:$0xff]  }
  0x3f   :  { %709 = vmatprep.subr.bf16.mxu0 %v1261_v39  ;;  %v1294_v39 = vld [vmem:[#allocation3 + $0x150] ss:$8 sps:$4 sm:$0xff]  }
  0x40   :  { %v1339_v63 = vld [vmem:[%s1621_s5 + $0x70] sm:$0xff]  }
  0x41   :  { %1162 = vmatpush3.bf16.msra.mxu1 %v1334_v0  ;;  %v1340_v0 = vld [vmem:[%s1621_s5 + $0x30] sm:$0xff]  }
  0x42   :  { %710 = vmatpush1.bf16.msra.mxu0 %v1263_v40  ;;  %1163 = vmatprep.subr.bf16.mxu1 %v1335_v1  ;;  %v1299_v40 = vld [vmem:[#allocation3 + $0x164] ss:$8 sps:$4 sm:$0xff]   ;;  %v1341_v1 = vld [vmem:[%s1621_s5 + $0x78] sm:$0xff]  }
  0x43   :  { %711 = vmatprep.subr.bf16.mxu0 %v1264_v41  ;;  %v1297_v41 = vld [vmem:[#allocation3 + $0x160] ss:$8 sps:$4 sm:$0xff]  }
  0x45   :  { %1164 = vmatpush3.bf16.msra.mxu1 %v1336_v2  ;;  %v1342_v2 = vld [vmem:[%s1621_s5 + $0x38] sm:$0xff]  }
  0x46   :  { %712 = vmatpush1.bf16.msra.mxu0 %v1266_v42  ;;  %1165 = vmatprep.subr.bf16.mxu1 %v1337_v3  ;;  %v1302_v42 = vld [vmem:[#allocation3 + $0x174] ss:$8 sps:$4 sm:$0xff]   ;;  %v1399_v3 = vmov 0.0  }
  0x47   :  { %713 = vmatprep.subr.bf16.mxu0 %v1267_v43  ;;  %v1300_v43 = vld [vmem:[#allocation3 + $0x170] ss:$8 sps:$4 sm:$0xff]  }
  0x49   :  { %1166 = vmatpush3.bf16.msra.mxu1 %v1338_v4  ;;  %v357_v4 = vld [vmem:[%s1620_s4] sm:$0x3] }
  0x4a   :  { %714 = vmatpush1.bf16.msra.mxu0 %v1269_v44  ;;  %v1305_v44 = vld [vmem:[#allocation3 + $0x184] ss:$8 sps:$4 sm:$0xff]   ;;  %1167 = vmatprep.subr.bf16.mxu1 %v1339_v63 }
  0x4b   :  { %715 = vmatprep.subr.bf16.mxu0 %v1270_v45  ;;  %v1303_v45 = vld [vmem:[#allocation3 + $0x180] ss:$8 sps:$4 sm:$0xff]  }
  0x4d   :  { %1168 = vmatpush3.bf16.msra.mxu1 %v1340_v0 }
  0x4e   :  { %716 = vmatpush1.bf16.msra.mxu0 %v1272_v46  ;;  %v1308_v46 = vld [vmem:[#allocation3 + $0x194] ss:$8 sps:$4 sm:$0xff]   ;;  %1169 = vmatprep.subr.bf16.mxu1 %v1341_v1 }
  0x4f   :  { %717 = vmatprep.subr.bf16.mxu0 %v1273_v47  ;;  %v1306_v47 = vld [vmem:[#allocation3 + $0x190] ss:$8 sps:$4 sm:$0xff]  }
  0x51   :  { %1170 = vmatpush3.bf16.msra.mxu1 %v1342_v2 }
  0x52   :  { %718 = vmatpush1.bf16.msra.mxu0 %v1275_v48  ;;  %v1311_v48 = vld [vmem:[#allocation3 + $0x1a4] ss:$8 sps:$4 sm:$0xff]   ;;  %1182 = vmatprep.subr.bf16.mxu1 %v1399_v3 }
  0x53   :  { %719 = vmatprep.subr.bf16.mxu0 %v1276_v49  ;;  %v1309_v49 = vld [vmem:[#allocation3 + $0x1a0] ss:$8 sps:$4 sm:$0xff]  }
  0x56   :  { %720 = vmatpush1.bf16.msra.mxu0 %v1278_v50  ;;  %v1314_v50 = vld [vmem:[#allocation3 + $0x1b4] ss:$8 sps:$4 sm:$0xff]  }
  0x57   :  { %730 = vmatprep.subr.bf16.mxu0 %v1281_v51  ;;  %v1312_v51 = vld [vmem:[#allocation3 + $0x1b0] ss:$8 sps:$4 sm:$0xff]  }
  0xf7   :  { %v196_v9 = vpop.f32.mrb[0].mxu1 }
  0xf8   :  { %v281_v10 = vadd.f32 %v264_v7, %v196_v9  ;;  %v198_v11 = vpop.f32.mrb[1].mxu1  ;;  %v362_v7 = vrot.slane %v357_v4, %v263_v5  ;;  %v1345_v5 = vld [vmem:[%s1623_s7 + $0x10] sm:$0xff]  }
  0xf9   :  { %v282_v12 = vadd.f32 %v268_v8, %v198_v11  ;;  %v200_v13 = vpop.f32.mrb[2].mxu1  ;;  %v366_v8 = vrot.slane %v357_v4, %v267_v6  ;;  %v1346_v6 = vld [vmem:[%s1623_s7 + $0x18] sm:$0xff]  }
  0xfa   :  { %v285_v14 = vmax.f32 %v281_v10, 0.0  ;;  %v201_v15 = vpop.f32.mrb[3].mxu1 }
  0xfb   :  { %v286_v16 = vmax.f32 %v282_v12, 0.0 }
  0xfc   :  { %v289_v19 = vpack.c.bf16 %v285_v14, %v285_v14 }
  0xfd   :  { %v290_v17 = vpack.c.bf16 %v286_v16, %v286_v16 }
  0xff   :  { %721 = vmatprep.mubr.bf16.mxu0 %v290_v17 }
 0x100   :  { %722 = vmatmul.mubr.bf16.vlgmr.msra.gmra.mrb[0].mxu0 %v289_v19 }
 0x101   :  { %731 = vmatpush1.bf16.msra.mxu0 %v1279_v18  ;;  %v1343_v18 = vld [vmem:[%s1623_s7] sm:$0xff]   ;;  %s1401_s7 = smov [#allocation6]  }
 0x102   :  { %732 = vmatprep.subr.bf16.mxu0 %v1284_v20  ;;  %s1041_s3 = sshll.u32 %s1401_s7, 4  ;;  %s1042_s3 = int_to_ptr.vmem [resolvable:$true] %s1041_s3 }
 0x103   :  { %p1374_p9 = scmp.lt.s32.totalorder %s1042_s3, %s1042_s3 }
 0x105   :  { %733 = vmatpush1.bf16.msra.mxu0 %v1282_v21  ;;  %v1132_v21 = vld [vmem:[%s1622_s6] ss:$0 sm:$0xff]  ;;  %s1369_s6 = scalar_lea.vmem %s1042_s3, 128 }
 0x106   :  { %734 = vmatprep.subr.bf16.mxu0 %v1287_v23  ;;  %p1370_p8 = scmp.ne.s32.totalorder %s1042_s3, %s1369_s6  ;;  %p1375_p10 = scmp.lt.s32.totalorder %s1369_s6, %s1369_s6 }
 0x107   :  { %v237_v27 = vpop.f32.mrb[4].mxu1 }
 0x108   :  { %v283_v28 = vadd.f32 %v272_v56, %v237_v27  ;;  %v239_v29 = vpop.f32.mrb[5].mxu1  ;;  %v1318_v56 = vld [vmem:[#allocation3 + $0x1d0] ss:$8 sps:$4 sm:$0xff]   ;;  %p1376_p11 = por %p1375_p10, %p1374_p9 }
 0x109   :  { %735 = vmatpush1.bf16.msra.mxu0 %v1285_v24  ;;  %v284_v31 = vadd.f32 %v276_v25, %v239_v29  ;;  %v241_v32 = vpop.f32.mrb[6].mxu1  ;;  %v1149_v29 = vld [vmem:[%s1624_s8] ss:$0 sm:$0xff] }
 0x10a   :  { %736 = vmatprep.subr.bf16.mxu0 %v1290_v26  ;;  %v242_v34 = vpop.f32.mrb[7].mxu1  ;;  %v287_v61 = vmax.f32 %v283_v28, 0.0  ;;  %p1377_p12 = pnand %p1376_p11, %p1370_p8 }
 0x10b   :  { %v288_v35 = vmax.f32 %v284_v31, 0.0 }
 0x10c   :  { %v291_v62 = vpack.c.bf16 %v287_v61, %v287_v61 }
 0x10d   :  { %737 = vmatpush1.bf16.msra.mxu0 %v1288_v30  ;;  %v292_v37 = vpack.c.bf16 %v288_v35, %v288_v35 }
 0x10e   :  { %738 = vmatprep.subr.bf16.mxu0 %v1293_v33 }
 0x10f   :  { %762 = vmatprep.mubr.bf16.mxu0 %v292_v37 }
 0x111   :  { %739 = vmatpush1.bf16.msra.mxu0 %v1291_v36 }
 0x112   :  { %740 = vmatprep.subr.bf16.mxu0 %v1296_v38 }
 0x115   :  { %741 = vmatpush1.bf16.msra.mxu0 %v1294_v39 }
 0x116   :  { %742 = vmatprep.subr.bf16.mxu0 %v1299_v40 }
 0x119   :  { %743 = vmatpush1.bf16.msra.mxu0 %v1297_v41 }
 0x11a   :  { %744 = vmatprep.subr.bf16.mxu0 %v1302_v42 }
 0x11d   :  { %745 = vmatpush1.bf16.msra.mxu0 %v1300_v43 }
 0x11e   :  { %746 = vmatprep.subr.bf16.mxu0 %v1305_v44 }
 0x121   :  { %747 = vmatpush1.bf16.msra.mxu0 %v1303_v45 }
 0x122   :  { %748 = vmatprep.subr.bf16.mxu0 %v1308_v46 }
 0x125   :  { %749 = vmatpush1.bf16.msra.mxu0 %v1306_v47 }
 0x126   :  { %750 = vmatprep.subr.bf16.mxu0 %v1311_v48 }
 0x129   :  { %751 = vmatpush1.bf16.msra.mxu0 %v1309_v49 }
 0x12a   :  { %752 = vmatprep.subr.bf16.mxu0 %v1314_v50 }
 0x12d   :  { %753 = vmatpush1.bf16.msra.mxu0 %v1312_v51 }
 0x12e   :  { %754 = vmatprep.subr.bf16.mxu0 %v1317_v52 }
 0x131   :  { %755 = vmatpush1.bf16.msra.mxu0 %v1315_v54 }
 0x132   :  { %756 = vmatprep.subr.bf16.mxu0 %v1320_v55 }
 0x135   :  { %757 = vmatpush1.bf16.msra.mxu0 %v1318_v56 }
 0x136   :  { %758 = vmatprep.subr.bf16.mxu0 %v1323_v57 }
 0x139   :  { %759 = vmatpush1.bf16.msra.mxu0 %v1321_v58 }
 0x13a   :  { %760 = vmatprep.subr.bf16.mxu0 %v1326_v59 }
 0x13d   :  { %761 = vmatpush1.bf16.msra.mxu0 %v1324_v60 }
 0x140   :  { %763 = vmatmul.mubr.bf16.vlgmr.msra.gmra.mrb[0].mxu0 %v291_v62 }
 0x213   :  { %v764_v9 = vpop.f32.mrb[0].mxu0 }
 0x214   :  { %v1194_v10 = vadd.f32 %v764_v9, %v362_v7  ;;  %v766_v11 = vpop.f32.mrb[1].mxu0 }
 0x215   :  { %v1195_v12 = vadd.f32 %v766_v11, %v366_v8  ;;  %v768_v13 = vpop.f32.mrb[2].mxu0 }
 0x216   :  { %v771_v14 = vmax.f32 %v1194_v10, 0.0  ;;  %v769_v15 = vpop.f32.mrb[3].mxu0 }
 0x217   :  { %v772_v16 = vmax.f32 %v1195_v12, 0.0 }
 0x218   :  { %v773_v19 = vpack.c.bf16 %v771_v14, %v771_v14 }
 0x219   :  { %v774_v17 = vpack.c.bf16 %v772_v16, %v772_v16 }
 0x21b   :  { %942 = vmatprep.mubr.bf16.mxu1 %v774_v17 }
 0x21c   :  { %943 = vmatmul.mubr.bf16.vlgmr.msra.gmra.mrb[8].mxu1 %v773_v19 }
 0x21d   :  { %1183 = vmatpush3.bf16.msra.mxu1 %v1343_v18  ;;  %1190 = vmatprep.mubr.msk.bf16.mxu1 %vm1400_vm1, %v1399_v3 }
 0x21e   :  { %1184 = vmatprep.subr.bf16.mxu1 %v1399_v3 }
 0x221   :  { %1185 = vmatpush3.bf16.msra.mxu1 %v1344_v53 }
 0x222   :  { %1186 = vmatprep.subr.bf16.mxu1 %v1399_v3 }
 0x225   :  { %1187 = vmatpush3.bf16.msra.mxu1 %v1345_v5 }
 0x226   :  { %1188 = vmatprep.subr.bf16.mxu1 %v1399_v3 }
 0x229   :  { %1189 = vmatpush3.bf16.msra.mxu1 %v1346_v6 }
 0x2ef   :  { %v1171_v20 = vpop.f32.mrb[8].mxu1 }
 0x2f0   :  { %v1172_v22 = vpop.f32.mrb[9].mxu1 }
 0x2f1   :  { %v1173_v23 = vadd.f32 %v1172_v22, %v1171_v20  ;;  %v1174_v24 = vpop.f32.mrb[10].mxu1 }
 0x2f2   :  { %v1175_v25 = vpop.f32.mrb[11].mxu1 }
 0x2f3   :  { %v945_v26 = vadd.f32 %v1173_v23, %v1132_v21 }
 0x2f5   :  { %v950_v27 = vmax.f32 %v945_v26, 0.0 }
 0x2f7   :  { %v951_v28 = vpack.c.bf16 %v950_v27, %v950_v27 }
 0x2f9   :  { %1191 = vmatmul.mubr.msk.bf16.vlgmr.msra.gmra.mrb[12].mxu1 %vm158_vm0, %v951_v28 }
 0x3cc   :  { %v1028_v30 = vpop.f32.mrb[12].mxu1 }
 0x3cd   :  { %v1029_v31 = vadd.f32 %v1149_v29, %v1028_v30  ;;  %v1192_v32 = vpop.f32.mrb[13].mxu1 }
 0x3ce   :  { %v1031_v33 = vpop.f32.mrb[14].mxu1 }
 0x3cf   :  { %1034 = vst [vmem:[#allocation6] sm:$0xff] %v1029_v31  ;;  %v1193_v34 = vpop.f32.mrb[15].mxu1 }
 0x3d0   :  { %1380 = shalt.err (!%p1377_p12)
}
 0x3d1   :  { %s1381_s8 = scalar_lea.hbm %s1625_s9, 128 }
 0x3d2   :  { %p1382_p13 = scmp.ne.s32.totalorder %s1625_s9, %s1381_s8  ;;  %p1385_p0 = scmp.lt.u32.totalorder %s1381_s8, %s1625_s9 }
 0x3d4   :  { %p1387_p1 = pnand %p1385_p0, %p1382_p13 }
 0x3d6   :  { %1390 = shalt.err (!%p1387_p1)
}
 0x3d7   :  { %1044 = dma.vmem_to_hbm [thread:$0]  %s1042_s3, 128, %s1625_s9, [#allocation5]  }
 0x3d8   :  { %1393 = dma.done.wait [#allocation5], 128  }
 0x3d9   :  { %1394 = vsyncadd [#allocation5], 4294967168 }
 0x3da   :  { %1048 = vsyncpa [#allocation4], 1 }
 0x3db   :  { %1049 = vsyncpa [#allocation5], 1 }

</bundles_post_ra>
